<compile_context>
chip_gen: v7x
topology: tpu7x:2x2x1
jax: 0.10.0
libtpu: 0.0.40
codegen_flags: <defaults>
</compile_context>

<pallas_src>
import jax
import jax.numpy as jnp
from jax.experimental import pallas as pl
from jax.experimental.pallas import tpu as pltpu


def _pooled_head_kernel(mask_ref, h_ref, wt_ref, b_ref, out_ref, acc_ref, cnt_ref):
    """One (batch element, seq tile) grid step.

    mask_ref: (1, tS)  bf16   attention mask row tile (0/1 values)
    h_ref:    (tS, D)  bf16   hidden-state tile for this batch element
    wt_ref:   (D, L)   f32    pre-transposed head weight (resident)
    b_ref:    (1, L)   f32    head bias (resident)
    out_ref:  (1, L)   f32    logits for this batch element
    acc_ref:  (1, D)   f32    running masked sum   (scratch)
    cnt_ref:  (1, 1)   f32    running valid-token count (scratch)
    """
    s = pl.program_id(1)

    @pl.when(s == 0)
    def _init():
        acc_ref[...] = jnp.zeros_like(acc_ref)
        cnt_ref[...] = jnp.zeros_like(cnt_ref)

    m = mask_ref[...]                                   # (1, tS) bf16
    hb = h_ref[...]                                     # (tS, D) bf16

    # Masked partial sum over this sequence tile on the MXU, f32 accumulation.
    acc_ref[...] += jnp.dot(m, hb, preferred_element_type=jnp.float32)      # (1, D)
    # Valid-token count (mask is exactly 0/1, so the f32 sum is exact).
    cnt_ref[...] += jnp.sum(m.astype(jnp.float32), axis=1, keepdims=True)   # (1, 1)

    @pl.when(s == pl.num_programs(1) - 1)
    def _finalize():
        # torch.clamp(mask.sum(1), min=1e-9); divide via EUP reciprocal.
        denom = jnp.maximum(cnt_ref[...], 1e-9)                    # (1, 1)
        pooled = acc_ref[...] * pl.reciprocal(denom, approx=True)  # (1, D) f32
        # Dropout (eval mode -> identity) + Linear: pooled @ W^T + b
        logits = jnp.dot(pooled, wt_ref[...],
                         preferred_element_type=jnp.float32)       # (1, L)
        out_ref[...] = logits + b_ref[...]


def llama_mlp_head(last_hidden_state, attention_mask, w, b, *,
                   seq_tile=128, vmem_limit_bytes=None):
    """Masked mean pooling + linear head (mean-pooling path of LlamaMLPModel).

    last_hidden_state: [B, S, D] bfloat16 (backbone last hidden state)
    attention_mask:    [B, S]    int/float (cast like .float(); values 0/1)
    w:                 [L, D]    float32   (torch.nn.Linear weight)
    b:                 [L]       float32   (torch.nn.Linear bias)
    returns logits:    [B, L]    float32
    """
    B, S, D = last_hidden_state.shape
    L = w.shape[0]
    h_dtype = last_hidden_state.dtype

    # Sequence tile must evenly divide S and be lane-friendly (multiple of 128)
    # unless it covers the whole sequence.
    if S % seq_tile != 0 or (seq_tile != S and seq_tile % 128 != 0):
        seq_tile = S
    n_s = S // seq_tile

    # Mask values are exactly 0/1, so casting to the hidden dtype is lossless
    # and lets the pooling contraction run natively on the MXU in bf16.
    mask3 = attention_mask.astype(h_dtype).reshape(B, 1, S)
    wt = w.T                      # (D, L): pre-transposed once, VMEM-resident
    b2d = b.reshape(1, L)

    out = pl.pallas_call(
        _pooled_head_kernel,
        out_shape=jax.ShapeDtypeStruct((B, 1, L), jnp.float32),
        grid=(B, n_s),
        in_specs=[
            # mask tile: (1, seq_tile) per (b, s)
            pl.BlockSpec((None, 1, seq_tile), lambda b_, s_: (b_, 0, s_)),
            # hidden-state tile: (seq_tile, D) per (b, s) — streamed over S
            pl.BlockSpec((None, seq_tile, D), lambda b_, s_: (b_, s_, 0)),
            # head weight / bias: resident across the whole grid
            pl.BlockSpec((D, L), lambda b_, s_: (0, 0)),
            pl.BlockSpec((1, L), lambda b_, s_: (0, 0)),
        ],
        out_specs=pl.BlockSpec((None, 1, L), lambda b_, s_: (b_, 0, 0)),
        scratch_shapes=[
            pltpu.VMEM((1, D), jnp.float32),   # masked-sum accumulator
            pltpu.VMEM((1, 1), jnp.float32),   # valid-token count
        ],
        compiler_params=pltpu.CompilerParams(
            dimension_semantics=("parallel", "arbitrary"),
            vmem_limit_bytes=vmem_limit_bytes,
        ),
    )(mask3, last_hidden_state, wt, b2d)
    return out.reshape(B, L)


def _reference(last_hidden_state, attention_mask, w, b):
    """Pure-JAX reference mirroring the PyTorch forward (mean pooling)."""
    h = last_hidden_state.astype(jnp.float32)
    mask = attention_mask.astype(jnp.float32)[:, :, None]
    sum_emb = jnp.sum(h * mask, axis=1)
    sum_mask = jnp.maximum(jnp.sum(mask, axis=1), 1e-9)   # torch.clamp(min=1e-9)
    pooled = sum_emb / sum_mask
    return pooled @ w.T + b


if __name__ == "__main__":
    # Small shapes consistent with the module (TOKEN_MAX_LEN-style sequence):
    #   batch B=4, seq S=256, hidden D=64 (emb_dim), num_labels L=5
    B, S, D, L = 4, 256, 64, 5

    key = jax.random.PRNGKey(0)
    k_h, k_w, k_b = jax.random.split(key, 3)

    # Synthetic backbone output (stands in for llama_peft hidden_states[-1]).
    last_hidden_state = jax.random.normal(k_h, (B, S, D), dtype=jnp.float32).astype(
        jnp.bfloat16
    )
    # Attention mask with variable lengths (1 = valid token, 0 = padding).
    lengths = jnp.array([256, 200, 93, 17], dtype=jnp.int32)
    attention_mask = (jnp.arange(S)[None, :] < lengths[:, None]).astype(jnp.int32)

    # Deterministic head parameters (torch.nn.Linear(emb_dim, num_labels)).
    w = jax.random.normal(k_w, (L, D), dtype=jnp.float32) * 0.02
    b = jax.random.normal(k_b, (L,), dtype=jnp.float32) * 0.02

    logits = llama_mlp_head(last_hidden_state, attention_mask, w, b, seq_tile=128)
    logits = jax.block_until_ready(logits)

    ref = _reference(last_hidden_state, attention_mask, w, b)
    assert logits.shape == (B, L)
    assert jnp.allclose(logits, ref, atol=2e-3, rtol=2e-3), (logits, ref)

    print("KERNEL_OK")
</pallas_src>

<mosaic_0001>
module attributes {stable_mosaic.version = 11 : i64} {
  func.func @_pooled_head_kernel(%arg0: i32, %arg1: i32, %arg2: memref<1x1x128xbf16, #tpu.memory_space<vmem>>, %arg3: memref<1x128x64xbf16, #tpu.memory_space<vmem>>, %arg4: memref<64x5xf32, #tpu.memory_space<vmem>>, %arg5: memref<1x5xf32, #tpu.memory_space<vmem>>, %arg6: memref<1x1x5xf32, #tpu.memory_space<vmem>>, %arg7: memref<1x64xf32, #tpu.memory_space<vmem>>, %arg8: memref<1x1xf32, #tpu.memory_space<vmem>>) attributes {dimension_semantics = [#tpu.dimension_semantics<parallel>, #tpu.dimension_semantics<arbitrary>], iteration_bounds = array<i64: 4, 2>, scalar_prefetch = 0 : i64, scratch_operands = 2 : i64, tpu.core_type = #tpu.core_type<tc>, window_params = [{transform_indices = @transform_0, window_bounds = array<i64: 1, 1, 128>}, {transform_indices = @transform_1, window_bounds = array<i64: 1, 128, 64>}, {pipeline_mode = #tpu.pipeline_mode<synchronous>, transform_indices = @transform_2, window_bounds = array<i64: 64, 5>}, {pipeline_mode = #tpu.pipeline_mode<synchronous>, transform_indices = @transform_3, window_bounds = array<i64: 1, 5>}, {transform_indices = @transform_4, window_bounds = array<i64: 1, 1, 5>}]} {
    %c0_i32 = arith.constant 0 : i32
    %0 = arith.cmpi eq, %arg1, %c0_i32 : i32
    %1 = arith.extui %0 : i1 to i32
    %c0_i32_0 = arith.constant 0 : i32
    %2 = arith.cmpi ne, %1, %c0_i32_0 : i32
    scf.if %2 {
      %cst_16 = arith.constant 0.000000e+00 : f32
      %20 = vector.broadcast %cst_16 : f32 to vector<1x64xf32>
      %c0_17 = arith.constant 0 : index
      %c0_18 = arith.constant 0 : index
      %21 = vector.load %arg7[%c0_17, %c0_18] : memref<1x64xf32, #tpu.memory_space<vmem>>, vector<1x64xf32>
      tpu.vector_store %arg7[%c0_17, %c0_18], %20 {strides = array<i32>} : memref<1x64xf32, #tpu.memory_space<vmem>>, vector<1x64xf32>,
      %cst_19 = arith.constant 0.000000e+00 : f32
      %22 = vector.broadcast %cst_19 : f32 to vector<1x1xf32>
      %c0_20 = arith.constant 0 : index
      %c0_21 = arith.constant 0 : index
      %23 = vector.load %arg8[%c0_20, %c0_21] : memref<1x1xf32, #tpu.memory_space<vmem>>, vector<1x1xf32>
      tpu.vector_store %arg8[%c0_20, %c0_21], %22 {strides = array<i32>} : memref<1x1xf32, #tpu.memory_space<vmem>>, vector<1x1xf32>,
    } else {
    }
    %c0 = arith.constant 0 : index
    %c0_1 = arith.constant 0 : index
    %c0_2 = arith.constant 0 : index
    %3 = vector.load %arg2[%c0, %c0_1, %c0_2] : memref<1x1x128xbf16, #tpu.memory_space<vmem>>, vector<1x1x128xbf16>
    %4 = vector.shape_cast %3 : vector<1x1x128xbf16> to vector<1x128xbf16>
    %c0_3 = arith.constant 0 : index
    %c0_4 = arith.constant 0 : index
    %c0_5 = arith.constant 0 : index
    %5 = vector.load %arg3[%c0_3, %c0_4, %c0_5] : memref<1x128x64xbf16, #tpu.memory_space<vmem>>, vector<1x128x64xbf16>
    %6 = vector.shape_cast %5 : vector<1x128x64xbf16> to vector<128x64xbf16>
    %c0_6 = arith.constant 0 : index
    %c0_7 = arith.constant 0 : index
    %7 = vector.load %arg7[%c0_6, %c0_7] : memref<1x64xf32, #tpu.memory_space<vmem>>, vector<1x64xf32>
    %cst = arith.constant dense<0.000000e+00> : vector<1x64xf32>
    %8 = tpu.matmul %4, %6, %cst {dimension_numbers = #tpu.dot_dimension_numbers<[1], [0], [0], [1], [0, 0, 1, 1], [], []>} : vector<1x128xbf16>, vector<128x64xbf16>, vector<1x64xf32> -> vector<1x64xf32>
    %9 = arith.addf %7, %8 : vector<1x64xf32>
    %c0_8 = arith.constant 0 : index
    %c0_9 = arith.constant 0 : index
    %10 = vector.load %arg7[%c0_8, %c0_9] : memref<1x64xf32, #tpu.memory_space<vmem>>, vector<1x64xf32>
    tpu.vector_store %arg7[%c0_8, %c0_9], %9 {strides = array<i32>} : memref<1x64xf32, #tpu.memory_space<vmem>>, vector<1x64xf32>,
    %c0_10 = arith.constant 0 : index
    %c0_11 = arith.constant 0 : index
    %11 = vector.load %arg8[%c0_10, %c0_11] : memref<1x1xf32, #tpu.memory_space<vmem>>, vector<1x1xf32>
    %12 = arith.extf %4 : vector<1x128xbf16> to vector<1x128xf32>
    %cst_12 = arith.constant dense<0.000000e+00> : vector<1xf32>
    %13 = vector.multi_reduction <add>, %12, %cst_12 [1] : vector<1x128xf32> to vector<1xf32>
    %14 = vector.shape_cast %13 : vector<1xf32> to vector<1x1xf32>
    %15 = arith.addf %11, %14 : vector<1x1xf32>
    %c0_13 = arith.constant 0 : index
    %c0_14 = arith.constant 0 : index
    %16 = vector.load %arg8[%c0_13, %c0_14] : memref<1x1xf32, #tpu.memory_space<vmem>>, vector<1x1xf32>
    tpu.vector_store %arg8[%c0_13, %c0_14], %15 {strides = array<i32>} : memref<1x1xf32, #tpu.memory_space<vmem>>, vector<1x1xf32>,
    %c1_i32 = arith.constant 1 : i32
    %17 = arith.cmpi eq, %arg1, %c1_i32 : i32
    %18 = arith.extui %17 : i1 to i32
    %c0_i32_15 = arith.constant 0 : i32
    %19 = arith.cmpi ne, %18, %c0_i32_15 : i32
    scf.if %19 {
      %c0_16 = arith.constant 0 : index
      %c0_17 = arith.constant 0 : index
      %20 = vector.load %arg8[%c0_16, %c0_17] : memref<1x1xf32, #tpu.memory_space<vmem>>, vector<1x1xf32>
      %cst_18 = arith.constant 9.99999971E-10 : f32
      %21 = vector.broadcast %cst_18 : f32 to vector<1x1xf32>
      %22 = arith.maximumf %20, %21 : vector<1x1xf32>
      %c0_19 = arith.constant 0 : index
      %c0_20 = arith.constant 0 : index
      %23 = vector.load %arg7[%c0_19, %c0_20] : memref<1x64xf32, #tpu.memory_space<vmem>>, vector<1x64xf32>
      %24 = tpu.reciprocal %22 {approx = true} : vector<1x1xf32> -> vector<1x1xf32>
      %25 = vector.broadcast %24 : vector<1x1xf32> to vector<1x64xf32>
      %26 = arith.mulf %23, %25 : vector<1x64xf32>
      %c0_21 = arith.constant 0 : index
      %c0_22 = arith.constant 0 : index
      %27 = vector.load %arg4[%c0_21, %c0_22] : memref<64x5xf32, #tpu.memory_space<vmem>>, vector<64x5xf32>
      %cst_23 = arith.constant dense<0.000000e+00> : vector<1x5xf32>
      %28 = tpu.matmul %26, %27, %cst_23 {dimension_numbers = #tpu.dot_dimension_numbers<[1], [0], [0], [1], [0, 0, 1, 1], [], []>} : vector<1x64xf32>, vector<64x5xf32>, vector<1x5xf32> -> vector<1x5xf32>
      %c0_24 = arith.constant 0 : index
      %c0_25 = arith.constant 0 : index
      %29 = vector.load %arg5[%c0_24, %c0_25] : memref<1x5xf32, #tpu.memory_space<vmem>>, vector<1x5xf32>
      %30 = arith.addf %28, %29 : vector<1x5xf32>
      %c0_26 = arith.constant 0 : index
      %c0_27 = arith.constant 0 : index
      %c0_28 = arith.constant 0 : index
      %31 = vector.load %arg6[%c0_26, %c0_27, %c0_28] : memref<1x1x5xf32, #tpu.memory_space<vmem>>, vector<1x1x5xf32>
      %32 = vector.shape_cast %31 : vector<1x1x5xf32> to vector<1x5xf32>
      %33 = vector.shape_cast %30 : vector<1x5xf32> to vector<1x1x5xf32>
      tpu.vector_store %arg6[%c0_26, %c0_27, %c0_28], %33 {strides = array<i32>} : memref<1x1x5xf32, #tpu.memory_space<vmem>>, vector<1x1x5xf32>,
    } else {
    }
    return
  }
  func.func @transform_0(%arg0: i32, %arg1: i32) -> (i32, i32, i32) {
    %c0_i32 = arith.constant 0 : i32
    %c0_i32_0 = arith.constant 0 : i32
    return %arg0, %c0_i32, %arg1 : i32, i32, i32
  }
  func.func @transform_1(%arg0: i32, %arg1: i32) -> (i32, i32, i32) {
    %c0_i32 = arith.constant 0 : i32
    %c0_i32_0 = arith.constant 0 : i32
    return %arg0, %arg1, %c0_i32 : i32, i32, i32
  }
  func.func @transform_2(%arg0: i32, %arg1: i32) -> (i32, i32) {
    %c0_i32 = arith.constant 0 : i32
    %c0_i32_0 = arith.constant 0 : i32
    %c0_i32_1 = arith.constant 0 : i32
    return %c0_i32, %c0_i32_0 : i32, i32
  }
  func.func @transform_3(%arg0: i32, %arg1: i32) -> (i32, i32) {
    %c0_i32 = arith.constant 0 : i32
    %c0_i32_0 = arith.constant 0 : i32
    %c0_i32_1 = arith.constant 0 : i32
    return %c0_i32, %c0_i32_0 : i32, i32
  }
  func.func @transform_4(%arg0: i32, %arg1: i32) -> (i32, i32, i32) {
    %c0_i32 = arith.constant 0 : i32
    %c0_i32_0 = arith.constant 0 : i32
    %c0_i32_1 = arith.constant 0 : i32
    return %arg0, %c0_i32, %c0_i32_0 : i32, i32, i32
  }
}

</mosaic_0001>

<bundles_post_ra>
// kernel: tpu_custom_call.1
= control target key start
LH: loop header
LB: loop body
LE: loop exit
PB: predicated region body
PF: predicated region fallthrough
CT: control target
= control target key end

     0   :  { %9 = vsyncpa [#allocation5], 0  ;;  %s1070_s0 = inlined_call_operand.vmem [shape: bf16[4,1,256], index: 0, kind: input, shape index: {}]   ;;  %s1071_s1 = inlined_call_operand.vmem [shape: bf16[4,256,64], index: 1, kind: input, shape index: {}]   ;;  %s1072_s2 = inlined_call_operand.vmem [shape: f32[64,5], index: 2, kind: input, shape index: {}]   ;;  %s1073_s3 = inlined_call_operand.vmem [shape: f32[1,5], index: 3, kind: input, shape index: {}]   ;;  %s1074_s4 = inlined_call_operand.hbm [shape: f32[4,1,5], index: 4, kind: output, shape index: {}]  }
   0x1   :  { %11 = vsyncpa [#allocation5 + $0x1], 0  ;;  %s891_s15 = smov 0   ;;  %s893_s16 = smov 0  }
   0x2   :  { %s895_s17 = smov 0   ;;  %s897_s18 = smov 0  }
   0x3   :  { %s899_s19 = smov 0   ;;  %s901_s20 = smov 0  }
   0x4   :  { %s903_s21 = smov 0   ;;  %s905_s22 = smov 0  }
   0x5 LB: > { %1077 = sst [smem:[#allocation7_spill]] %s852_s21  ;;  %s581_s23 = sadd.s32 4294967295, %s856_s22   ;;  %s856_s22 = sphi %s905_s22, %s17_s22   ;;  %s852_s21 = sphi %s903_s21, %s1086_s21   ;;  %s848_s20 = sphi %s901_s20, %s1091_s20   ;;  %s844_s19 = sphi %s899_s19, %s1084_s19   ;;  %s840_s18 = sphi %s897_s18, %s1090_s18   ;;  %s836_s17 = sphi %s895_s17, %s1089_s17   ;;  %s832_s16 = sphi %s893_s16, %s1088_s16   ;;  %s828_s15 = sphi %s891_s15, %s1087_s15  }
   0x6   : > { %s582_s24 = sadd.s32 4294967294, %s856_s22   ;;  %s26_s25 = sadd.s32 1, %s848_s20 }
   0x7   : > { %p27_p0 = scmp.ge.s32.totalorder %s26_s25, 2  ;;  %s29_s26 = sadd.s32 1, %s852_s21 }
   0x8   : > { %p144_p1 = scmp.ne.s32.totalorder %s836_s17, %s832_s16  ;;  %p145_p2 = scmp.eq.s32.totalorder %s581_s23, 7 }
   0x9   : > { %s1093_s25 = smov (%p27_p0, %s26_s25), 0  ;;  %s1095_s26 = smov (!%p27_p0, %s29_s26), %s852_s21 }
   0xa   : > { %1078 = sst [smem:[#allocation8_spill]] %s1093_s25  ;;  %p940_p3 = por %p145_p2, %p144_p1 }
   0xb   : > { %p150_p4 = scmp.ne.s32.totalorder %s832_s16, %s828_s15  ;;  %p31_p5 = scmp.ge.s32.totalorder %s1095_s26, 4 }
   0xc   : > { %p151_p6 = scmp.eq.s32.totalorder %s582_s24, 7  ;;  %p585_p7 = scmp.ge.s32.totalorder %s856_s22, 1 }
   0xd   : > { %p198_p8 = scmp.lt.s32.totalorder %s856_s22, 9  ;;  %s1097_s26 = smov (%p31_p5, %s1095_s26), 0 }
   0xe   : > { %1080 = sst [smem:[#allocation9_spill]] %s1097_s26  ;;  %p950_p9 = por %p151_p6, %p150_p4 }
   0xf   : > { %p199_p10 = pnand %p585_p7, %p198_p8  ;;  %s131_s29 = ssub.s32 %s852_s21, %s1097_s26 }
  0x10   : > { %s134_s30 = sadd.s32 1, %s836_s17  ;;  %p132_p11 = scmp.eq.s32.totalorder %s131_s29, 0 }
  0x11   : > { %202 = sbr.rel (%p199_p10) target bundleno = 578 (0x242), region = 36  ;;  %p234_p12 = scmp.lt.s32.totalorder (!%p199_p10), %s844_s19, 3 }
  0x12   : > { %s958_s5 = scalar_select %p132_p11, %s836_s17, %s134_s30  }
  0x13   : > { %p236_p13 = scmp.lt.s32.totalorder (!%p199_p10), %s840_s18, 1  ;;  %s587_s10 = sshll.u32 (!%p199_p10), %s840_s18, 4 }
  0x14   : > { %p244_p0 = scmp.lt.s32.totalorder (!%p199_p10), %s587_s10, 31  ;;  %s1082_s25 = sand.u32 (!%p199_p10), 1, %s832_s16  }
  0x15   : > { %s976_s21 = scalar_lea.vmem (!%p199_p10), [#allocation4], %s1082_s25  ;;  %p590_p1 = scmp.ne.s32.totalorder (!%p199_p10), %s840_s18, 0 }
  0x18   : > { %s235_s7 = scalar_select %p234_p12, %s844_s19, 3 }
  0x19   : > { %s237_s8 = scalar_select %p236_p13, %s840_s18, 1 }
  0x1a   : > { %s586_s9 = sshll.u32 %s235_s7, 1  ;;  %s588_s23 = sshll.u32 %s235_s7, 5  ;;  %vm256_vm0 = vcmask (!%p590_p1), 516096   ;;  %vm258_vm1 = vcmask (!%p590_p1), 0   ;;  %v858_v0 = vmov (!%p590_p1), 0.0  }
  0x1b   : > { %s239_s11 = sadd.s32 %s586_s9, %s237_s8  ;;  %s1099_s10 = smov (!%p244_p0, %s587_s10), 31  ;;  %257 = vst.msk [vmem:[#allocation2] sm:$0x1] (!%p590_p1), %vm256_vm0, %v858_v0 }
  0x1c   : > { %s240_s14 = scalar_lea.vmem %s1070_s0, %s239_s11  ;;  %s247_s24 = sadd.s32 %s588_s23, %s1099_s10  ;;  %259 = vst.msk [vmem:[#allocation3] sm:$0x1] (!%p590_p1), %vm258_vm1, %v858_v0 }
  0x1d   : > { %s589_s29 = sshll.u32 %s247_s24, 2  ;;  %255 = sbr.rel (%p590_p1) target bundleno = 36 (0x24), region = 40 }
  0x1e   : > { %s972_s6 = scalar_lea.vmem %s1071_s1, %s589_s29 }
  0x24 PF: > { %v751_v1 = vld [vmem:[%s972_s6] sm:$0xff]   ;;  %v859_v2 = vmov 0.0   ;;  %v752_v3 = vld [vmem:[%s972_s6 + $0x8] sm:$0xff]   ;;  %vm860_vm2 = vmmov 0   ;;  %v753_v4 = vld [vmem:[%s972_s6 + $0x10] sm:$0xff]   ;;  %vm371_vm3 = vcmask 1040384  }
  0x25   : > { %622 = vmatprep.subr.bf16.mxu0 %v859_v2  ;;  %638 = vmatprep.mubr.msk.bf16.mxu0 %vm860_vm2, %v859_v2  ;;  %v260_v5 = vld [vmem:[%s240_s14] sm:$0x1]  ;;  %v754_v7 = vld [vmem:[%s972_s6 + $0x18] sm:$0xff]   ;;  %v756_v10 = vld [vmem:[%s972_s6 + $0x28] sm:$0xff]   ;;  %vm376_vm4 = vcmask 0   ;;  %vm367_vm5 = vcmask 516096  }
  0x26   : > { %623 = vmatpush3.bf16.msra.mxu0 %v751_v1  ;;  %v370_v6 = vunpack.c.l.bf16 %v260_v5  ;;  %v755_v9 = vld [vmem:[%s972_s6 + $0x20] sm:$0xff]   ;;  %v757_v11 = vld [vmem:[%s972_s6 + $0x30] sm:$0xff]   ;;  %v758_v12 = vld [vmem:[%s972_s6 + $0x38] sm:$0xff]   ;;  %p599_p2 = scmp.ne.s32.totalorder %s840_s18, 1 }
  0x27   : > { %624 = vmatprep.subr.bf16.mxu0 %v859_v2  ;;  %v369_v13 = vld [vmem:[#allocation3] sm:$0x1]  ;;  %v277_v16 = vld [vmem:[#allocation2] sm:$0x1]  ;;  %v397_v24 = vld [vmem:[%s1072_s2 + $0x8] sm:$0xff] (!%p599_p2)  ;;  %v861_v25 = vmov (!%p599_p2), 0   ;;  %v391_v40 = vlaneseq (!%p599_p2) }
  0x28   : > { %v372_v8 = vsel %vm371_vm3, %v370_v6, 0.0  ;;  %v396_v23 = vld [vmem:[%s1072_s2] sm:$0xff] (!%p599_p2)  ;;  %759 = vset.pattern.permute.xlu0 (!%p599_p2), %v861_v25  ;;  %v862_v27 = vmov (!%p599_p2), 0.0|0.0   ;;  %v398_v29 = vld [vmem:[%s1072_s2 + $0x10] sm:$0xff] (!%p599_p2)  ;;  %v399_v30 = vld [vmem:[%s1072_s2 + $0x18] sm:$0xff] (!%p599_p2)  ;;  %vm863_vm6 = vmmov (!%p599_p2), 0  }
  0x29   : > { %373 = vadd.xlane.f32.xlu0 %v372_v8  ;;  %v662_v28 = vpack.c.bf16 (!%p599_p2), %v397_v24, %v396_v23  ;;  %v665_v31 = vpack.c.bf16 (!%p599_p2), %v399_v30, %v398_v29  ;;  %v400_v32 = vld [vmem:[%s1072_s2 + $0x20] sm:$0xff] (!%p599_p2)  ;;  %v401_v33 = vld [vmem:[%s1072_s2 + $0x28] sm:$0xff] (!%p599_p2)  ;;  %v402_v35 = vld [vmem:[%s1072_s2 + $0x30] sm:$0xff] (!%p599_p2)  ;;  %v864_v39 = vmov (!%p599_p2), 0.0   ;;  %v392_v41 = vshrl.u32 (!%p599_p2), %v391_v40, 7 }
  0x2a   : > { %625 = vmatpush3.bf16.msra.mxu0 %v752_v3  ;;  %v668_v34 = vpack.c.bf16 (!%p599_p2), %v401_v33, %v400_v32  ;;  %v403_v36 = vld [vmem:[%s1072_s2 + $0x38] sm:$0xff] (!%p599_p2)  ;;  %vm405_vm7 = vcmask (!%p599_p2), 523264   ;;  %v404_v47 = vld [vmem:[%s1073_s3] sm:$0x1] (!%p599_p2)  ;;  %vm479_vm8 = vcmask (!%p599_p2), 32768  }
  0x2b   : > { %626 = vmatprep.subr.bf16.mxu0 %v859_v2  ;;  %v671_v38 = vpack.c.bf16 (!%p599_p2), %v403_v36, %v402_v35  ;;  %v393_v42 = vsub.s32 (!%p599_p2), 0, %v392_v41 }
  0x2e   : > { %627 = vmatpush3.bf16.msra.mxu0 %v753_v4 }
  0x2f   : > { %628 = vmatprep.subr.bf16.mxu0 %v859_v2 }
  0x32   : > { %629 = vmatpush3.bf16.msra.mxu0 %v754_v7 }
  0x33   : > { %630 = vmatprep.subr.bf16.mxu0 %v859_v2 }
  0x36   : > { %631 = vmatpush3.bf16.msra.mxu0 %v755_v9 }
  0x37   : > { %632 = vmatprep.subr.bf16.mxu0 %v859_v2 }
  0x3a   : > { %633 = vmatpush3.bf16.msra.mxu0 %v756_v10 }
  0x3b   : > { %634 = vmatprep.subr.bf16.mxu0 %v859_v2 }
  0x3e   : > { %635 = vmatpush3.bf16.msra.mxu0 %v757_v11 }
  0x3f   : > { %636 = vmatprep.subr.bf16.mxu0 %v859_v2 }
  0x42   : > { %637 = vmatpush3.bf16.msra.mxu0 %v758_v12 }
  0x43   : > { %661 = vmatprep.subr.bf16.mxu0 (!%p599_p2), %v862_v27 }
  0x45   : > { %639 = vmatmul.mubr.bf16.vlgmr.msra.gmra.mrb[0].mxu0 %v260_v5 }
  0x46   : > { %663 = vmatpush3.bf16.msra.mxu0 (!%p599_p2), %v662_v28  ;;  %658 = vmatprep.mubr.msk.f32.mxu0 (!%p599_p2), %vm863_vm6, %v864_v39 }
  0x47   : > { %664 = vmatprep.subr.bf16.mxu0 (!%p599_p2), %v862_v27 }
  0x4a   : > { %666 = vmatpush3.bf16.msra.mxu0 (!%p599_p2), %v665_v31 }
  0x4b   : > { %667 = vmatprep.subr.bf16.mxu0 (!%p599_p2), %v862_v27 }
  0x4e   : > { %669 = vmatpush3.bf16.msra.mxu0 (!%p599_p2), %v668_v34 }
  0x4f   : > { %670 = vmatprep.subr.bf16.mxu0 (!%p599_p2), %v862_v27 }
  0x52   : > { %672 = vmatpush3.bf16.msra.mxu0 (!%p599_p2), %v671_v38 }
  0xb6   : > { %v374_v14 = vpop.xlane.xlu0 %373 }
  0xb7   : > { %v375_v15 = vadd.f32 %v374_v14, %v369_v13 }
  0xb9   : > { %377 = vst.msk [vmem:[#allocation3] sm:$0x1] %vm376_vm4, %v375_v15 }
  0xc0   : > { %v382_v22 = vld [vmem:[#allocation3] sm:$0x1] (!%p599_p2) }
  0xc1   : > { %v383_v26 = vmax.f32 (!%p599_p2), %v382_v22, 1e-09 }
  0xc3   : > { %760 = vrcp.f32 (!%p599_p2), %v383_v26 }
  0xcd   : > { %v761_v37 = vpop.eup (!%p599_p2), %760 }
  0xce   : > { %388 = vperm.xlu0 (!%p599_p2), %759, %v761_v37  }
 0x115   : > { %381 = sbr.rel (%p599_p2) target bundleno = 553 (0x229), region = 44 }
 0x118   : > { %v360_v17 = vpop.f32.mrb[0].mxu0 }
 0x119   : > { %v366_v18 = vadd.f32 %v360_v17, %v277_v16  ;;  %v640_v19 = vpop.f32.mrb[1].mxu0 }
 0x11a   : > { %v363_v20 = vpop.f32.mrb[2].mxu0 }
 0x11b   : > { %368 = vst.msk [vmem:[#allocation2] sm:$0x1] %vm367_vm5, %v366_v18  ;;  %v641_v21 = vpop.f32.mrb[3].mxu0 }
 0x122   : > { %v384_v43 = vld [vmem:[#allocation2] sm:$0x1] }
 0x14d   : > { %v389_v44 = vpop.permute.xlu0 %388 }
 0x14e   : > { %v394_v45 = vrot.slane %v389_v44, %v393_v42 }
 0x150   : > { %v395_v46 = vmul.f32 %v394_v45, %v384_v43 }
 0x152   : > { %659 = vmatmul.mubr.msk.f32.vlgmr.msra.gmra.mrb[0].mxu0 %vm405_vm7, %v395_v46 }
 0x225   : > { %v475_v48 = vpop.f32.mrb[0].mxu0 }
 0x226   : > { %v476_v49 = vadd.f32 %v475_v48, %v404_v47  ;;  %v660_v50 = vpop.f32.mrb[1].mxu0 }
 0x228   : > { %480 = vst.msk [vmem:[%s976_s21] sm:$0x1] %vm479_vm8, %v476_v49 }
 0x229 PF: > { %s601_s6 = sshll.u32 %s844_s19, 4  ;;  %s494_s18 = sshll.u32 %s976_s21, 4  ;;  %s495_s18 = int_to_ptr.vmem [resolvable:$true] %s494_s18 }
 0x22a   : > { %s1020_s9 = scalar_lea.hbm %s1074_s4, %s601_s6  ;;  %s1083_s10 = sand.u32 1, %s832_s16  }
 0x22b   : > { %s482_s11 = scalar_lea.sflag [#allocation5], %s1083_s10  ;;  %s762_s12 = scalar_lea.vmem %s495_s18, 16 }
 0x22c   : > { %p763_p4 = scmp.ne.s32.totalorder %s495_s18, %s762_s12  ;;  %s865_s13 = smov [#allocation4]  }
 0x22d   : > { %s766_s14 = sshll.u32 %s865_s13, 4  ;;  %s767_s14 = int_to_ptr.vmem [resolvable:$false] %s766_s14 }
 0x22e   : > { %p764_p5 = pnand %p763_p4, %p940_p3  ;;  %s768_s23 = scalar_lea.vmem %s767_s14, 32 }
 0x22f   : > { %p769_p7 = scmp.lt.s32.totalorder %s495_s18, %s767_s14  ;;  %p770_p8 = scmp.lt.s32.totalorder %s768_s23, %s762_s12 }
 0x230   : > { %p765_p6 = pneg %p764_p5 }
 0x231   : > { %p771_p10 = por %p770_p8, %p769_p7 }
 0x233   : > { %p772_p11 = pnand %p771_p10, %p765_p6 }
 0x235   : > { %775 = shalt.err (!%p772_p11)
}
 0x236   : > { %s776_s19 = scalar_lea.hbm %s1020_s9, 16  ;;  %s780_s29 = scalar_lea.hbm %s1074_s4, 64 }
 0x237   : > { %p777_p12 = scmp.ne.s32.totalorder %s1020_s9, %s776_s19  ;;  %p781_p1 = scmp.lt.u32.totalorder %s1020_s9, %s1074_s4 }
 0x238   : > { %p782_p2 = scmp.lt.u32.totalorder %s780_s29, %s776_s19  ;;  %p784_p5 = scmp.lt.u32.totalorder %s776_s19, %s1020_s9 }
 0x239   : > { %p778_p13 = pnand %p777_p12, %p940_p3 }
 0x23a   : > { %p783_p4 = por %p782_p2, %p781_p1 }
 0x23b   : > { %p779_p0 = pneg %p778_p13 }
 0x23c   : > { %p785_p6 = por %p784_p5, %p783_p4 }
 0x23e   : > { %p786_p7 = pnand %p785_p6, %p779_p0 }
 0x240   : > { %789 = shalt.err (!%p786_p7)
}
 0x241   : > { %673 = dma.vmem_to_hbm [thread:$0]  (%p940_p3), %s495_s18, 16, %s1020_s9, %s482_s11  }
 0x242 PF: > { %p679_p8 = scmp.ge.s32.totalorder %s856_s22, 2  ;;  %s506_s26 = sand.u32 1, %s828_s15  }
 0x243   : > { %s507_s6 = scalar_lea.sflag [#allocation5], %s506_s26 }
 0x244   : > { %p676_p10 = pnand %p679_p8, %p950_p9 }
 0x246   : > { %823 = dma.done.wait (!%p676_p10), %s507_s6, 16  }
 0x247   : > { %825 = vsyncadd (!%p676_p10), %s507_s6, 4294967280  ;;  %s17_s22 = sadd.s32 1, %s856_s22   ;;  %s1084_s19 = sld [smem:[#allocation7_spill]] }
 0x248   : > { %p14_p11 = scmp.ge.s32.totalorder %s17_s22, 10   ;;  %s1085_s27 = sld [smem:[#allocation8_spill]] }
 0x249   : > { %s1086_s21 = sld [smem:[#allocation9_spill]]  ;;  %s1087_s15 = smov %s832_s16 }
 0x24a   : > { %s1088_s16 = smov %s836_s17  ;;  %s1089_s17 = smov %s958_s5 }
 0x24b   : > { %s1090_s18 = smov %s848_s20  ;;  %16 = sbr.rel (!%p14_p11) target bundleno = 5 (0x5), region = 82 }
 0x24e   : > { %s1091_s20 = smov %s1085_s27 }
 0x252   :  { %511 = vsyncpa [#allocation5], 1 }
 0x253   :  { %513 = vsyncpa [#allocation5 + $0x1], 1 }

</bundles_post_ra>
